<compile_context>
chip_gen: v7x
topology: tpu7x:2x2x1
jax: 0.10.0
libtpu: 0.0.40
codegen_flags: <defaults>
</compile_context>

<pallas_src>
import functools

import jax
import jax.numpy as jnp
from jax.experimental import pallas as pl
from jax.experimental.pallas import tpu as pltpu


def _n_network_kernel(obs_ref, w1_ref, b1_ref, w2_ref, b2_ref, w3_ref, b3_ref,
                      o_ref, *, compute_dtype):
    """Fused 3-layer ensemble MLP. All refs are full arrays in VMEM."""
    E = w1_ref.shape[0]
    obs = obs_ref[...]                                         # (B, In), f32
    B, In = obs.shape

    # torch: observation[None].repeat(E, 1, 1)  -> broadcast inside the kernel.
    x = jnp.broadcast_to(obs[None, :, :], (E, B, In)).astype(compute_dtype)

    def ensemble_fc(h, w_ref, b_ref):
        # Batched (over E) matmul on the MXU, f32 accumulation, f32 bias add.
        acc = jnp.einsum(
            "ebi,eio->ebo",
            h,
            w_ref[...].astype(compute_dtype),
            preferred_element_type=jnp.float32,
        )
        return acc + b_ref[...][:, None, :]                    # f32

    h1 = jnp.maximum(ensemble_fc(x, w1_ref, b1_ref), 0.0).astype(compute_dtype)
    h2 = jnp.maximum(ensemble_fc(h1, w2_ref, b2_ref), 0.0).astype(compute_dtype)
    y = ensemble_fc(h2, w3_ref, b3_ref)                        # (E, B, Out), f32
    o_ref[...] = y.astype(o_ref.dtype)


def n_network_forward(observation, params, compute_dtype=jnp.float32):
    """observation: (B, In) f32; params: ((W1,b1),(W2,b2),(W3,b3)).

    Returns (E, B, Out). Single pallas_call, no grid: every operand is a
    full-array VMEM block (total footprint ~tens of KB for these shapes).
    compute_dtype=jnp.bfloat16 casts only the matmul operands (MXU fast path
    on v6e/v7x); accumulation and bias/ReLU stay in float32.
    """
    (w1, b1), (w2, b2), (w3, b3) = params
    B = observation.shape[0]
    E = w1.shape[0]
    out_dim = w3.shape[-1]

    kernel = functools.partial(_n_network_kernel, compute_dtype=compute_dtype)
    vmem = pl.BlockSpec(memory_space=pltpu.MemorySpace.VMEM)

    return pl.pallas_call(
        kernel,
        out_shape=jax.ShapeDtypeStruct((E, B, out_dim), observation.dtype),
        in_specs=[vmem] * 7,
        out_specs=vmem,
    )(observation, w1, b1, w2, b2, w3, b3)


def n_network_ref(observation, params):
    """Plain-JAX reference mirroring the PyTorch forward."""
    (w1, b1), (w2, b2), (w3, b3) = params
    E = w1.shape[0]
    x = jnp.broadcast_to(observation[None, :, :], (E,) + observation.shape)
    h = jax.nn.relu(jnp.einsum("ebi,eio->ebo", x, w1) + b1[:, None, :])
    h = jax.nn.relu(jnp.einsum("ebi,eio->ebo", h, w2) + b2[:, None, :])
    return jnp.einsum("ebi,eio->ebo", h, w3) + b3[:, None, :]


def _init_ensemble_fc(key, ensemble_size, in_features, out_features):
    """Xavier-uniform weight (torch.nn.init.xavier_uniform_ fan rule for a
    3-D (E, In, Out) tensor: fan_in = In*Out, fan_out = E*Out), zero bias."""
    fan_in = in_features * out_features
    fan_out = ensemble_size * out_features
    bound = (6.0 / (fan_in + fan_out)) ** 0.5
    w = jax.random.uniform(
        key, (ensemble_size, in_features, out_features),
        dtype=jnp.float32, minval=-bound, maxval=bound)
    b = jnp.zeros((ensemble_size, out_features), dtype=jnp.float32)
    return w, b


if __name__ == "__main__":
    # N_Network defaults: hidden_size=32, ensemble_size=7, output_size=6,
    # prediction_type='deterministic'; small observation/batch for the test.
    observation_space = 24
    hidden_size = 32
    ensemble_size = 7
    output_size = 6
    batch = 8

    key = jax.random.PRNGKey(0)
    k_obs, k1, k2, k3 = jax.random.split(key, 4)

    params = (
        _init_ensemble_fc(k1, ensemble_size, observation_space, hidden_size),
        _init_ensemble_fc(k2, ensemble_size, hidden_size, hidden_size),
        _init_ensemble_fc(k3, ensemble_size, hidden_size, output_size),
    )
    observation = jax.random.normal(k_obs, (batch, observation_space),
                                    dtype=jnp.float32)

    ref = n_network_ref(observation, params)

    # f32 path: faithful to the PyTorch module.
    out_f32 = jax.block_until_ready(
        n_network_forward(observation, params, compute_dtype=jnp.float32))
    assert out_f32.shape == (ensemble_size, batch, output_size)
    assert jnp.allclose(out_f32, ref, atol=2e-4, rtol=2e-4)

    # bf16 matmul-operand path (MXU fast path on v6e/v7x), f32 accumulation.
    out_bf16 = jax.block_until_ready(
        n_network_forward(observation, params, compute_dtype=jnp.bfloat16))
    assert out_bf16.shape == (ensemble_size, batch, output_size)
    assert bool(jnp.all(jnp.isfinite(out_bf16)))
    assert jnp.allclose(out_bf16, ref, atol=1e-1, rtol=1e-1)

    print("KERNEL_OK")
</pallas_src>

<mosaic_0001>
module attributes {stable_mosaic.version = 11 : i64} {
  func.func @_n_network_kernel(%arg0: memref<8x24xf32, #tpu.memory_space<vmem>>, %arg1: memref<7x24x32xf32, #tpu.memory_space<vmem>>, %arg2: memref<7x32xf32, #tpu.memory_space<vmem>>, %arg3: memref<7x32x32xf32, #tpu.memory_space<vmem>>, %arg4: memref<7x32xf32, #tpu.memory_space<vmem>>, %arg5: memref<7x32x6xf32, #tpu.memory_space<vmem>>, %arg6: memref<7x6xf32, #tpu.memory_space<vmem>>, %arg7: memref<7x8x6xf32, #tpu.memory_space<vmem>>) attributes {dimension_semantics = [], scalar_prefetch = 0 : i64, scratch_operands = 0 : i64, tpu.core_type = #tpu.core_type<tc>} {
    %c0 = arith.constant 0 : index
    %c0_0 = arith.constant 0 : index
    %0 = vector.load %arg0[%c0, %c0_0] : memref<8x24xf32, #tpu.memory_space<vmem>>, vector<8x24xf32>
    %1 = vector.shape_cast %0 : vector<8x24xf32> to vector<1x8x24xf32>
    %2 = vector.shape_cast %1 : vector<1x8x24xf32> to vector<1x8x24xf32>
    %3 = vector.broadcast %2 : vector<1x8x24xf32> to vector<7x8x24xf32>
    %c0_1 = arith.constant 0 : index
    %c0_2 = arith.constant 0 : index
    %c0_3 = arith.constant 0 : index
    %4 = vector.load %arg1[%c0_1, %c0_2, %c0_3] : memref<7x24x32xf32, #tpu.memory_space<vmem>>, vector<7x24x32xf32>
    "tpu.trace_start"() <{level = 10 : i32, message = "ebi,eio->ebo"}> : () -> ()
    %cst = arith.constant dense<0.000000e+00> : vector<7x8x32xf32>
    %5 = tpu.matmul %3, %4, %cst {dimension_numbers = #tpu.dot_dimension_numbers<[2], [1], [1], [2], [0, 0, 0, 1, 1, 2], [0], [0]>} : vector<7x8x24xf32>, vector<7x24x32xf32>, vector<7x8x32xf32> -> vector<7x8x32xf32>
    "tpu.trace_stop"() : () -> ()
    %c0_4 = arith.constant 0 : index
    %c0_5 = arith.constant 0 : index
    %6 = vector.load %arg2[%c0_4, %c0_5] : memref<7x32xf32, #tpu.memory_space<vmem>>, vector<7x32xf32>
    %7 = vector.shape_cast %6 : vector<7x32xf32> to vector<7x1x32xf32>
    %8 = vector.broadcast %7 : vector<7x1x32xf32> to vector<7x8x32xf32>
    %9 = arith.addf %5, %8 : vector<7x8x32xf32>
    %cst_6 = arith.constant 0.000000e+00 : f32
    %10 = vector.broadcast %cst_6 : f32 to vector<7x8x32xf32>
    %11 = arith.maximumf %9, %10 : vector<7x8x32xf32>
    %c0_7 = arith.constant 0 : index
    %c0_8 = arith.constant 0 : index
    %c0_9 = arith.constant 0 : index
    %12 = vector.load %arg3[%c0_7, %c0_8, %c0_9] : memref<7x32x32xf32, #tpu.memory_space<vmem>>, vector<7x32x32xf32>
    "tpu.trace_start"() <{level = 10 : i32, message = "ebi,eio->ebo"}> : () -> ()
    %cst_10 = arith.constant dense<0.000000e+00> : vector<7x8x32xf32>
    %13 = tpu.matmul %11, %12, %cst_10 {dimension_numbers = #tpu.dot_dimension_numbers<[2], [1], [1], [2], [0, 0, 0, 1, 1, 2], [0], [0]>} : vector<7x8x32xf32>, vector<7x32x32xf32>, vector<7x8x32xf32> -> vector<7x8x32xf32>
    "tpu.trace_stop"() : () -> ()
    %c0_11 = arith.constant 0 : index
    %c0_12 = arith.constant 0 : index
    %14 = vector.load %arg4[%c0_11, %c0_12] : memref<7x32xf32, #tpu.memory_space<vmem>>, vector<7x32xf32>
    %15 = vector.shape_cast %14 : vector<7x32xf32> to vector<7x1x32xf32>
    %16 = vector.broadcast %15 : vector<7x1x32xf32> to vector<7x8x32xf32>
    %17 = arith.addf %13, %16 : vector<7x8x32xf32>
    %cst_13 = arith.constant 0.000000e+00 : f32
    %18 = vector.broadcast %cst_13 : f32 to vector<7x8x32xf32>
    %19 = arith.maximumf %17, %18 : vector<7x8x32xf32>
    %c0_14 = arith.constant 0 : index
    %c0_15 = arith.constant 0 : index
    %c0_16 = arith.constant 0 : index
    %20 = vector.load %arg5[%c0_14, %c0_15, %c0_16] : memref<7x32x6xf32, #tpu.memory_space<vmem>>, vector<7x32x6xf32>
    "tpu.trace_start"() <{level = 10 : i32, message = "ebi,eio->ebo"}> : () -> ()
    %cst_17 = arith.constant dense<0.000000e+00> : vector<7x8x6xf32>
    %21 = tpu.matmul %19, %20, %cst_17 {dimension_numbers = #tpu.dot_dimension_numbers<[2], [1], [1], [2], [0, 0, 0, 1, 1, 2], [0], [0]>} : vector<7x8x32xf32>, vector<7x32x6xf32>, vector<7x8x6xf32> -> vector<7x8x6xf32>
    "tpu.trace_stop"() : () -> ()
    %c0_18 = arith.constant 0 : index
    %c0_19 = arith.constant 0 : index
    %22 = vector.load %arg6[%c0_18, %c0_19] : memref<7x6xf32, #tpu.memory_space<vmem>>, vector<7x6xf32>
    %23 = vector.shape_cast %22 : vector<7x6xf32> to vector<7x1x6xf32>
    %24 = vector.broadcast %23 : vector<7x1x6xf32> to vector<7x8x6xf32>
    %25 = arith.addf %21, %24 : vector<7x8x6xf32>
    %c0_20 = arith.constant 0 : index
    %c0_21 = arith.constant 0 : index
    %c0_22 = arith.constant 0 : index
    %26 = vector.load %arg7[%c0_20, %c0_21, %c0_22] : memref<7x8x6xf32, #tpu.memory_space<vmem>>, vector<7x8x6xf32>
    tpu.vector_store %arg7[%c0_20, %c0_21, %c0_22], %25 {strides = array<i32>} : memref<7x8x6xf32, #tpu.memory_space<vmem>>, vector<7x8x6xf32>,
    return
  }
}

</mosaic_0001>

<bundles_post_ra>
// kernel: tpu_custom_call.1
= control target key start
LH: loop header
LB: loop body
LE: loop exit
PB: predicated region body
PF: predicated region fallthrough
CT: control target
= control target key end

     0   :  { %12 = vsyncpa [#allocation3], 0  ;;  %s2391_s24 = smov [#allocation2]   ;;  %s2806_s0 = inlined_call_operand.vmem [shape: f32[8,24], index: 0, kind: input, shape index: {}]   ;;  %s2807_s1 = inlined_call_operand.hbm [shape: f32[7,24,32], index: 1, kind: input, shape index: {}]   ;;  %s2808_s2 = inlined_call_operand.vmem [shape: f32[7,32], index: 2, kind: input, shape index: {}]   ;;  %s2809_s3 = inlined_call_operand.vmem [shape: f32[7,32,32], index: 3, kind: input, shape index: {}]   ;;  %s2810_s4 = inlined_call_operand.vmem [shape: f32[7,32], index: 4, kind: input, shape index: {}]   ;;  %s2811_s5 = inlined_call_operand.vmem [shape: f32[7,32,6], index: 5, kind: input, shape index: {}]   ;;  %s2812_s6 = inlined_call_operand.vmem [shape: f32[7,6], index: 6, kind: input, shape index: {}]   ;;  %s2813_s7 = inlined_call_operand.vmem [shape: f32[7,8,6], index: 7, kind: output, shape index: {}]  }
   0x1   :  { %s20_s25 = sshll.u32 %s2391_s24, 4  ;;  %s2367_s28 = scalar_lea.hbm %s2807_s1, 2688  ;;  %s21_s25 = int_to_ptr.vmem [resolvable:$true] %s20_s25 }
   0x2   :  { %p2368_p0 = scmp.ne.s32.totalorder %s2807_s1, %s2367_s28  ;;  %p2371_p1 = scmp.lt.u32.totalorder %s2367_s28, %s2807_s1 }
   0x4   :  { %p2373_p2 = pnand %p2371_p1, %p2368_p0 }
   0x6   :  { %2376 = shalt.err (!%p2373_p2)
}
   0x7   :  { %s2377_s10 = scalar_lea.vmem %s21_s25, 2688  ;;  %p2382_p4 = scmp.lt.s32.totalorder %s21_s25, %s21_s25 }
   0x8   :  { %p2378_p3 = scmp.ne.s32.totalorder %s21_s25, %s2377_s10  ;;  %p2383_p5 = scmp.lt.s32.totalorder %s2377_s10, %s2377_s10 }
   0xa   :  { %p2384_p6 = por %p2383_p5, %p2382_p4 }
   0xc   :  { %p2385_p7 = pnand %p2384_p6, %p2378_p3 }
   0xe   :  { %2388 = shalt.err (!%p2385_p7)
}
   0xf   :  { %s2392_s11 = smov 128   ;;  %s2393_s12 = smov 8  }
  0x10   :  { %26 = dma.hbm_to_vmem [thread:$0]  %s2807_s1, 2688, %s21_s25, [#allocation3], %s2392_s11, %s2392_s11, %s2393_s12  }
  0x11   :  { %2389 = dma.done.wait [#allocation3], 2688  }
  0x12   :  { %2390 = vsyncadd [#allocation3], 4294964608  ;;  %v2394_v0 = vmov 0.0|0.0   ;;  %vm2395_vm0 = vmmov 0   ;;  %v2396_v1 = vmov 0.0   ;;  %v41_v2 = vld [vmem:[#allocation2] sm:$0xff]  ;;  %v68_v45 = vlaneseq }
  0x13   :  { %2253 = vmatprep.subr.bf16.mxu0 %v2394_v0  ;;  %2042 = vmatprep.mubr.msk.f32.mxu0 %vm2395_vm0, %v2396_v1  ;;  %v42_v3 = vld [vmem:[#allocation2 + $0x8] sm:$0xff]  ;;  %v44_v5 = vld [vmem:[#allocation2 + $0x18] sm:$0xff]  ;;  %v45_v6 = vld [vmem:[#allocation2 + $0x20] sm:$0xff]  ;;  %vm147_vm1 = vcmask 195584   ;;  %v2397_v43 = vmov 1966171168  }
  0x14   :  { %2256 = vmatprep.subr.bf16.mxu1 %v2394_v0  ;;  %2051 = vmatprep.mubr.msk.f32.mxu1 %vm2395_vm0, %v2396_v1  ;;  %v2254_v4 = vpack.c.bf16 %v42_v3, %v41_v2  ;;  %v2257_v7 = vpack.c.bf16 %v45_v6, %v44_v5  ;;  %v47_v8 = vld [vmem:[#allocation2 + $0x30] sm:$0xff]  ;;  %v48_v9 = vld [vmem:[#allocation2 + $0x38] sm:$0xff]  ;;  %v40_v11 = vld [vmem:[%s2806_s0] sm:$0xff]  ;;  %v66_v44 = vunpack.c.l.s4 %v2397_v43  ;;  %v69_v47 = vshrl.u32 %v68_v45, 7 }
  0x15   :  { %v43_v10 = vld [vmem:[#allocation2 + $0x10] sm:$0xff]  ;;  %v2260_v12 = vpack.c.bf16 %v48_v9, %v47_v8  ;;  %v50_v13 = vld [vmem:[#allocation2 + $0x48] sm:$0xff]  ;;  %v53_v17 = vld [vmem:[#allocation2 + $0x60] sm:$0xff]  ;;  %vm761_vm2 = vcmask 261120   ;;  %vm1904_vm3 = vcmask 48128  }
  0x16   :  { %2255 = vmatpush3.bf16.msra.mxu0 %v2254_v4  ;;  %2258 = vmatpush3.bf16.msra.mxu1 %v2257_v7  ;;  %v51_v14 = vld [vmem:[#allocation2 + $0x50] sm:$0xff]  ;;  %v46_v15 = vld [vmem:[#allocation2 + $0x28] sm:$0xff]  ;;  %v49_v19 = vld [vmem:[#allocation2 + $0x40] sm:$0xff]  ;;  %v67_v46 = vunpack.c.0.s8 %v66_v44  ;;  %v2529_v53 = vsub.s32 0, %v69_v47 }
  0x17   :  { %2040 = vmatprep.subr.mxu0 %v2396_v1  ;;  %2049 = vmatprep.subr.mxu1 %v2396_v1  ;;  %v2263_v16 = vpack.c.bf16 %v51_v14, %v50_v13  ;;  %v54_v18 = vld [vmem:[#allocation2 + $0x68] sm:$0xff]  ;;  %v56_v21 = vld [vmem:[#allocation2 + $0x78] sm:$0xff]  ;;  %v57_v22 = vld [vmem:[#allocation2 + $0x80] sm:$0xff] }
  0x18   :  { %v2266_v20 = vpack.c.bf16 %v54_v18, %v53_v17  ;;  %v52_v23 = vld [vmem:[#allocation2 + $0x58] sm:$0xff]  ;;  %v2269_v24 = vpack.c.bf16 %v57_v22, %v56_v21  ;;  %v59_v25 = vld [vmem:[#allocation2 + $0x90] sm:$0xff]  ;;  %v648_v29 = vld [vmem:[%s2809_s3] sm:$0xff]  ;;  %v2522_v48 = vsub.s32 %v67_v46, %v69_v47 }
  0x19   :  { %v60_v26 = vld [vmem:[#allocation2 + $0x98] sm:$0xff]  ;;  %v55_v27 = vld [vmem:[#allocation2 + $0x70] sm:$0xff]  ;;  %v649_v30 = vld [vmem:[%s2809_s3 + $0x8] sm:$0xff] }
  0x1a   :  { %2041 = vmatpush3.msra.mxu0 %v43_v10  ;;  %2050 = vmatpush3.msra.mxu1 %v46_v15  ;;  %v2272_v28 = vpack.c.bf16 %v60_v26, %v59_v25  ;;  %v58_v31 = vld [vmem:[#allocation2 + $0x88] sm:$0xff]  ;;  %v2275_v32 = vpack.c.bf16 %v649_v30, %v648_v29  ;;  %v61_v33 = vld [vmem:[#allocation2 + $0xa0] sm:$0xff]  ;;  %v650_v34 = vld [vmem:[%s2809_s3 + $0x10] sm:$0xff] }
  0x1b   :  { %2043 = vmatmul.mubr.msk.f32.vlgmr.msra.gmra.mrb[0].mxu0 %vm147_vm1, %v40_v11  ;;  %2259 = vmatprep.subr.bf16.mxu0 %v2394_v0  ;;  %v651_v35 = vld [vmem:[%s2809_s3 + $0x18] sm:$0xff]  ;;  %v652_v37 = vld [vmem:[%s2809_s3 + $0x20] sm:$0xff]  ;;  %v653_v38 = vld [vmem:[%s2809_s3 + $0x28] sm:$0xff] }
  0x1c   :  { %2261 = vmatpush3.bf16.msra.mxu0 %v2260_v12  ;;  %2060 = vmatprep.mubr.msk.f32.mxu0 %vm2395_vm0, %v2396_v1  ;;  %v2278_v36 = vpack.c.bf16 %v651_v35, %v650_v34  ;;  %v2281_v39 = vpack.c.bf16 %v653_v38, %v652_v37  ;;  %v654_v40 = vld [vmem:[%s2809_s3 + $0x30] sm:$0xff]  ;;  %v655_v41 = vld [vmem:[%s2809_s3 + $0x38] sm:$0xff]  ;;  %v62_v49 = vld [vmem:[%s2808_s2] sm:$0x7f] }
  0x1d   :  { %2058 = vmatprep.subr.mxu0 %v2396_v1  ;;  %2052 = vmatmul.mubr.msk.f32.vlgmr.msra.gmra.mrb[0].mxu1 %vm147_vm1, %v40_v11  ;;  %v2284_v42 = vpack.c.bf16 %v655_v41, %v654_v40  ;;  %v71_v50 = vrot.slane %v62_v49, %v2522_v48  ;;  %v64_v56 = vcombine.high %v62_v49, %v62_v49  ;;  %v656_v57 = vld [vmem:[%s2809_s3 + $0x40] sm:$0xff]  ;;  %v657_v58 = vld [vmem:[%s2809_s3 + $0x48] sm:$0xff]  ;;  %v658_v10 = vld [vmem:[%s2809_s3 + $0x50] sm:$0xff] }
  0x1e   :  { %2262 = vmatprep.subr.bf16.mxu1 %v2394_v0  ;;  %2069 = vmatprep.mubr.msk.f32.mxu1 %vm2395_vm0, %v2396_v1  ;;  %v2287_v3 = vpack.c.bf16 %v657_v58, %v656_v57  ;;  %v660_v4 = vld [vmem:[%s2809_s3 + $0x60] sm:$0xff]  ;;  %v661_v5 = vld [vmem:[%s2809_s3 + $0x68] sm:$0xff]  ;;  %v662_v21 = vld [vmem:[%s2809_s3 + $0x70] sm:$0xff] }
  0x1f   :  { %2264 = vmatpush3.bf16.msra.mxu1 %v2263_v16  ;;  %v79_v51 = vcombine.high %v71_v50, %v71_v50  ;;  %v87_v52 = vrot.slane %v71_v50, %v2522_v48  ;;  %v78_v2 = vrot.slane %v64_v56, %v2522_v48  ;;  %v2293_v15 = vpack.c.bf16 %v661_v5, %v660_v4  ;;  %v663_v22 = vld [vmem:[%s2809_s3 + $0x78] sm:$0xff]  ;;  %v664_v25 = vld [vmem:[%s2809_s3 + $0x80] sm:$0xff]  ;;  %v665_v26 = vld [vmem:[%s2809_s3 + $0x88] sm:$0xff] }
  0x20   :  { %2059 = vmatpush3.msra.mxu0 %v49_v19  ;;  %2067 = vmatprep.subr.mxu1 %v2396_v1  ;;  %v668_v35 = vld [vmem:[%s2809_s3 + $0xa0] sm:$0xff]  ;;  %v666_v37 = vld [vmem:[%s2809_s3 + $0x90] sm:$0xff]  ;;  %v667_v38 = vld [vmem:[%s2809_s3 + $0x98] sm:$0xff] }
  0x21   :  { %2061 = vmatmul.mubr.msk.f32.vlgmr.msra.gmra.mrb[2].mxu0 %vm147_vm1, %v40_v11  ;;  %2265 = vmatprep.subr.bf16.mxu0 %v2394_v0  ;;  %v101_v54 = vrot.slane %v79_v51, %v2522_v48  ;;  %v115_v55 = vrot.slane %v87_v52, %v2529_v53  ;;  %v109_v59 = vcombine.high %v87_v52, %v87_v52  ;;  %v670_v47 = vld [vmem:[%s2809_s3 + $0xb0] sm:$0xff]  ;;  %v671_v49 = vld [vmem:[%s2809_s3 + $0xb8] sm:$0xff]  ;;  %v672_v50 = vld [vmem:[%s2809_s3 + $0xc0] sm:$0xff] }
  0x22   :  { %2267 = vmatpush3.bf16.msra.mxu0 %v2266_v20  ;;  %2078 = vmatprep.mubr.msk.f32.mxu0 %vm2395_vm0, %v2396_v1  ;;  %v80_v14 = vcombine.high %v78_v2, %v78_v2  ;;  %v94_v16 = vrot.slane %v78_v2, %v2522_v48  ;;  %v2302_v46 = vpack.c.bf16 %v667_v38, %v666_v37  ;;  %v673_v51 = vld [vmem:[%s2809_s3 + $0xc8] sm:$0xff]  ;;  %v674_v2 = vld [vmem:[%s2809_s3 + $0xd0] sm:$0xff]  ;;  %v1291_v38 = vld [vmem:[%s2811_s5 + $0x58] sm:$0xff] }
  0x23   :  { %2076 = vmatprep.subr.mxu0 %v2396_v1  ;;  %2068 = vmatpush3.msra.mxu1 %v52_v23  ;;  %v119_v61 = vrot.slane %v101_v54, %v2529_v53  ;;  %v111_v6 = vcombine.high %v101_v54, %v101_v54  ;;  %v123_v9 = vrot.slane %v109_v59, %v2529_v53  ;;  %v1290_v37 = vld [vmem:[%s2811_s5 + $0x50] sm:$0xff] }
  0x24   :  { %2070 = vmatmul.mubr.msk.f32.vlgmr.msra.gmra.mrb[2].mxu1 %vm147_vm1, %v40_v11  ;;  %2268 = vmatprep.subr.bf16.mxu1 %v2394_v0  ;;  %v131_v30 = vrot.slane %v94_v16, %v2529_v53  ;;  %v110_v45 = vcombine.high %v94_v16, %v94_v16  ;;  %v2308_v58 = vpack.c.bf16 %v671_v49, %v670_v47  ;;  %v1287_v16 = vld [vmem:[%s2811_s5 + $0x38] sm:$0xff]  ;;  %v1294_v47 = vld [vmem:[%s2811_s5 + $0x70] sm:$0xff] }
  0x25   :  { %2270 = vmatpush3.bf16.msra.mxu1 %v2269_v24  ;;  %2087 = vmatprep.mubr.msk.f32.mxu1 %vm2395_vm0, %v2396_v1  ;;  %v127_v20 = vrot.slane %v111_v6, %v2529_v53  ;;  %v2311_v59 = vpack.c.bf16 %v673_v51, %v672_v50  ;;  %v1295_v49 = vld [vmem:[%s2811_s5 + $0x78] sm:$0xff]  ;;  %v1296_v50 = vld [vmem:[%s2811_s5 + $0x80] sm:$0xff]  ;;  %v1297_v51 = vld [vmem:[%s2811_s5 + $0x88] sm:$0xff] }
  0x26   :  { %2077 = vmatpush3.msra.mxu0 %v55_v27  ;;  %2085 = vmatprep.subr.mxu1 %v2396_v1  ;;  %v108_v27 = vrot.slane %v80_v14, %v2522_v48  ;;  %v139_v57 = vrot.slane %v110_v45, %v2529_v53 }
  0x27   :  { %2079 = vmatmul.mubr.msk.f32.vlgmr.msra.gmra.mrb[4].mxu0 %vm147_vm1, %v40_v11  ;;  %2271 = vmatprep.subr.bf16.mxu0 %v2394_v0 }
  0x28   :  { %2273 = vmatpush3.bf16.msra.mxu0 %v2272_v28  ;;  %2096 = vmatprep.mubr.msk.f32.mxu0 %vm2395_vm0, %v2396_v1  ;;  %v135_v41 = vrot.slane %v108_v27, %v2529_v53 }
  0x29   :  { %2094 = vmatprep.subr.mxu0 %v2396_v1  ;;  %2086 = vmatpush3.msra.mxu1 %v58_v31  ;;  %v2296_v31 = vpack.c.bf16 %v663_v22, %v662_v21 }
  0x2a   :  { %2088 = vmatmul.mubr.msk.f32.vlgmr.msra.gmra.mrb[4].mxu1 %vm147_vm1, %v40_v11  ;;  %2274 = vmatprep.subr.bf16.mxu1 %v2394_v0 }
  0x2b   :  { %2276 = vmatpush3.bf16.msra.mxu1 %v2275_v32  ;;  %2107 = vmatprep.mubr.msk.f32.mxu1 %vm2395_vm0, %v2396_v1  ;;  %v2299_v32 = vpack.c.bf16 %v665_v26, %v664_v25  ;;  %v1289_v25 = vld [vmem:[%s2811_s5 + $0x48] sm:$0xff] }
  0x2c   :  { %2095 = vmatpush3.msra.mxu0 %v61_v33  ;;  %2277 = vmatprep.subr.bf16.mxu1 %v2394_v0 }
  0x2d   :  { %2097 = vmatmul.mubr.msk.f32.vlgmr.msra.gmra.mrb[6].mxu0 %vm147_vm1, %v40_v11  ;;  %2280 = vmatprep.subr.bf16.mxu0 %v2394_v0  ;;  %v659_v11 = vld [vmem:[%s2809_s3 + $0x58] sm:$0xff] }
  0x2e   :  { %2118 = vmatprep.mubr.msk.f32.mxu0 %vm2395_vm0, %v2396_v1  ;;  %2282 = vmatpush3.bf16.msra.mxu0 %v2281_v39  ;;  %v2290_v19 = vpack.c.bf16 %v659_v11, %v658_v10  ;;  %v1283_v10 = vld [vmem:[%s2811_s5 + $0x18] sm:$0xff] }
  0x2f   :  { %2279 = vmatpush3.bf16.msra.mxu1 %v2278_v36  ;;  %2283 = vmatprep.subr.bf16.mxu0 %v2394_v0  ;;  %v669_v36 = vld [vmem:[%s2809_s3 + $0xa8] sm:$0xff] }
  0x30   :  { %2286 = vmatprep.subr.bf16.mxu1 %v2394_v0  ;;  %v2305_v44 = vpack.c.bf16 %v669_v36, %v668_v35 }
  0x32   :  { %2285 = vmatpush3.bf16.msra.mxu0 %v2284_v42 }
  0x33   :  { %2292 = vmatprep.subr.bf16.mxu0 %v2394_v0 }
  0xee   :  { %v217_v60 = vpop.f32.mrb[0].mxu0 }
  0xef   :  { %v218_v62 = vadd.f32 %v217_v60, %v115_v55  ;;  %v2044_v63 = vpop.f32.mrb[1].mxu0 }
  0xf0   :  { %v287_v8 = vpop.f32.mrb[0].mxu1 }
  0xf1   :  { %v641_v7 = vmax.f32 %v218_v62, 0.0  ;;  %v288_v12 = vadd.f32 %v287_v8, %v119_v61  ;;  %v2053_v13 = vpop.f32.mrb[1].mxu1  ;;  %v1280_v61 = vld [vmem:[%s2811_s5] sm:$0xff]  ;;  %v1281_v62 = vld [vmem:[%s2811_s5 + $0x8] sm:$0xff] }
  0xf2   :  { %v2317_v6 = vpack.c.bf16 %v1281_v62, %v1280_v61  ;;  %v1285_v13 = vld [vmem:[%s2811_s5 + $0x28] sm:$0xff]  ;;  %v1300_v61 = vld [vmem:[%s2811_s5 + $0xa0] sm:$0xff] }
  0xf3   :  { %2108 = vmatmul.mubr.msk.f32.vlgmr.msra.gmra.mrb[6].mxu1 %vm761_vm2, %v641_v7  ;;  %v642_v17 = vmax.f32 %v288_v12, 0.0  ;;  %v1284_v12 = vld [vmem:[%s2811_s5 + $0x20] sm:$0xff]  ;;  %v1301_v62 = vld [vmem:[%s2811_s5 + $0xa8] sm:$0xff] }
  0xf4   :  { %2288 = vmatpush3.bf16.msra.mxu1 %v2287_v3  ;;  %v357_v18 = vpop.f32.mrb[2].mxu0  ;;  %2129 = vmatprep.mubr.msk.f32.mxu1 %vm2395_vm0, %v2396_v1  ;;  %v675_v3 = vld [vmem:[%s2809_s3 + $0xd8] sm:$0xff]  ;;  %v2323_v14 = vpack.c.bf16 %v1285_v13, %v1284_v12  ;;  %v1302_v12 = vld [vmem:[%s2811_s5 + $0xb0] sm:$0xff] }
  0xf5   :  { %v358_v23 = vadd.f32 %v357_v18, %v123_v9  ;;  %v2062_v24 = vpop.f32.mrb[3].mxu0  ;;  %2289 = vmatprep.subr.bf16.mxu1 %v2394_v0  ;;  %2119 = vmatmul.mubr.msk.f32.vlgmr.msra.gmra.mrb[8].mxu0 %vm761_vm2, %v642_v17  ;;  %v2314_v7 = vpack.c.bf16 %v675_v3, %v674_v2  ;;  %v1282_v9 = vld [vmem:[%s2811_s5 + $0x10] sm:$0xff]  ;;  %v676_v18 = vld [vmem:[%s2810_s4] sm:$0x7f]  ;;  %v1303_v13 = vld [vmem:[%s2811_s5 + $0xb8] sm:$0xff] }
  0xf6   :  { %2294 = vmatpush3.bf16.msra.mxu0 %v2293_v15  ;;  %2140 = vmatprep.mubr.msk.f32.mxu0 %vm2395_vm0, %v2396_v1  ;;  %v2320_v11 = vpack.c.bf16 %v1283_v10, %v1282_v9  ;;  %v1286_v15 = vld [vmem:[%s2811_s5 + $0x30] sm:$0xff]  ;;  %v1288_v24 = vld [vmem:[%s2811_s5 + $0x40] sm:$0xff]  ;;  %v2347_v9 = vpack.c.bf16 %v1301_v62, %v1300_v61 }
  0xf7   :  { %v643_v28 = vmax.f32 %v358_v23, 0.0  ;;  %v427_v29 = vpop.f32.mrb[2].mxu1  ;;  %2295 = vmatprep.subr.bf16.mxu0 %v2394_v0  ;;  %v2326_v17 = vpack.c.bf16 %v1287_v16, %v1286_v15  ;;  %v1298_v3 = vld [vmem:[%s2811_s5 + $0x90] sm:$0xff]  ;;  %v1305_v15 = vld [vmem:[%s2811_s5 + $0xc8] sm:$0xff] }
  0xf8   :  { %2291 = vmatpush3.bf16.msra.mxu1 %v2290_v19  ;;  %v428_v33 = vadd.f32 %v427_v29, %v127_v20  ;;  %v2071_v34 = vpop.f32.mrb[3].mxu1  ;;  %v685_v19 = vrot.slane %v676_v18, %v2522_v48 }
  0xf9   :  { %2298 = vmatprep.subr.bf16.mxu1 %v2394_v0  ;;  %v1293_v34 = vld [vmem:[%s2811_s5 + $0x68] sm:$0xff] }
  0xfa   :  { %v644_v39 = vmax.f32 %v428_v33, 0.0  ;;  %v497_v40 = vpop.f32.mrb[4].mxu0  ;;  %2297 = vmatpush3.bf16.msra.mxu0 %v2296_v31  ;;  %v693_v20 = vcombine.high %v685_v19, %v685_v19  ;;  %v701_v21 = vrot.slane %v685_v19, %v2522_v48  ;;  %v678_v31 = vcombine.high %v676_v18, %v676_v18  ;;  %v1292_v33 = vld [vmem:[%s2811_s5 + $0x60] sm:$0xff] }
  0xfb   :  { %2130 = vmatmul.mubr.msk.f32.vlgmr.msra.gmra.mrb[8].mxu1 %vm761_vm2, %v643_v28  ;;  %v498_v42 = vadd.f32 %v497_v40, %v131_v30  ;;  %v2080_v43 = vpop.f32.mrb[5].mxu0  ;;  %2304 = vmatprep.subr.bf16.mxu0 %v2394_v0 }
  0xfc   :  { %2300 = vmatpush3.bf16.msra.mxu1 %v2299_v32  ;;  %2151 = vmatprep.mubr.msk.f32.mxu1 %vm2395_vm0, %v2396_v1  ;;  %v715_v22 = vrot.slane %v693_v20, %v2522_v48  ;;  %v729_v23 = vrot.slane %v701_v21, %v2529_v53  ;;  %v723_v30 = vcombine.high %v701_v21, %v701_v21 }
  0xfd   :  { %2301 = vmatprep.subr.bf16.mxu1 %v2394_v0  ;;  %v567_v52 = vpop.f32.mrb[4].mxu1  ;;  %2141 = vmatmul.mubr.msk.f32.vlgmr.msra.gmra.mrb[10].mxu0 %vm761_vm2, %v644_v39  ;;  %v645_v56 = vmax.f32 %v498_v42, 0.0  ;;  %v2329_v32 = vpack.c.bf16 %v1289_v25, %v1288_v24  ;;  %v2335_v43 = vpack.c.bf16 %v1293_v34, %v1292_v33  ;;  %v2350_v21 = vpack.c.bf16 %v1303_v13, %v1302_v12  ;;  %v1306_v25 = vld [vmem:[%s2811_s5 + $0xd0] sm:$0xff] }
  0xfe   :  { %v568_v54 = vadd.f32 %v567_v52, %v135_v41  ;;  %v2089_v55 = vpop.f32.mrb[5].mxu1  ;;  %2306 = vmatpush3.bf16.msra.mxu0 %v2305_v44  ;;  %2162 = vmatprep.mubr.msk.f32.mxu0 %vm2395_vm0, %v2396_v1  ;;  %v733_v27 = vrot.slane %v715_v22, %v2529_v53  ;;  %v725_v41 = vcombine.high %v715_v22, %v715_v22 }
  0xff   :  { %2307 = vmatprep.subr.bf16.mxu0 %v2394_v0  ;;  %v737_v42 = vrot.slane %v723_v30, %v2529_v53  ;;  %v692_v44 = vrot.slane %v678_v31, %v2522_v48 }
 0x100   :  { %2303 = vmatpush3.bf16.msra.mxu1 %v2302_v46  ;;  %v637_v60 = vpop.f32.mrb[6].mxu0  ;;  %v646_v4 = vmax.f32 %v568_v54, 0.0  ;;  %v2332_v46 = vpack.c.bf16 %v1291_v38, %v1290_v37  ;;  %v741_v54 = vrot.slane %v725_v41, %v2529_v53 }
 0x101   :  { %2310 = vmatprep.subr.bf16.mxu1 %v2394_v0  ;;  %v2098_v63 = vpop.f32.mrb[7].mxu0  ;;  %v638_v5 = vadd.f32 %v637_v60, %v139_v57  ;;  %v694_v55 = vcombine.high %v692_v44, %v692_v44  ;;  %v2341_v60 = vpack.c.bf16 %v1297_v51, %v1296_v50 }
 0x102   :  { %2309 = vmatpush3.bf16.msra.mxu0 %v2308_v58  ;;  %v708_v58 = vrot.slane %v692_v44, %v2522_v48 }
 0x103   :  { %2152 = vmatmul.mubr.msk.f32.vlgmr.msra.gmra.mrb[10].mxu1 %vm761_vm2, %v645_v56  ;;  %2316 = vmatprep.subr.bf16.mxu0 %v2394_v0  ;;  %v647_v8 = vmax.f32 %v638_v5, 0.0 }
 0x104   :  { %2312 = vmatpush3.bf16.msra.mxu1 %v2311_v59  ;;  %2173 = vmatprep.mubr.msk.f32.mxu1 %vm2395_vm0, %v2396_v1  ;;  %v2338_v59 = vpack.c.bf16 %v1295_v49, %v1294_v47  ;;  %v724_v20 = vcombine.high %v708_v58, %v708_v58 }
 0x105   :  { %2313 = vmatprep.subr.bf16.mxu1 %v2394_v0  ;;  %2163 = vmatmul.mubr.msk.f32.vlgmr.msra.gmra.mrb[12].mxu0 %vm761_vm2, %v646_v4  ;;  %v1299_v4 = vld [vmem:[%s2811_s5 + $0x98] sm:$0xff] }
 0x106   :  { %2318 = vmatpush3.bf16.msra.mxu0 %v2317_v6  ;;  %2184 = vmatprep.mubr.msk.f32.mxu0 %vm2395_vm0, %v2396_v1 }
 0x107   :  { %2319 = vmatprep.subr.bf16.mxu0 %v2394_v0 }
 0x108   :  { %2315 = vmatpush3.bf16.msra.mxu1 %v2314_v7  ;;  %v722_v7 = vrot.slane %v694_v55, %v2522_v48 }
 0x109   :  { %2322 = vmatprep.subr.bf16.mxu1 %v2394_v0 }
 0x10a   :  { %2321 = vmatpush3.bf16.msra.mxu0 %v2320_v11  ;;  %v2344_v11 = vpack.c.bf16 %v1299_v4, %v1298_v3 }
 0x10b   :  { %2174 = vmatmul.mubr.msk.f32.vlgmr.msra.gmra.mrb[12].mxu1 %vm761_vm2, %v647_v8  ;;  %2328 = vmatprep.subr.bf16.mxu0 %v2394_v0  ;;  %v745_v8 = vrot.slane %v708_v58, %v2529_v53 }
 0x10c   :  { %2195 = vmatprep.mubr.msk.f32.mxu1 %vm2395_vm0, %v2396_v1  ;;  %2324 = vmatpush3.bf16.msra.mxu1 %v2323_v14  ;;  %v1304_v14 = vld [vmem:[%s2811_s5 + $0xc0] sm:$0xff] }
 0x10d   :  { %2325 = vmatprep.subr.bf16.mxu1 %v2394_v0  ;;  %v2353_v22 = vpack.c.bf16 %v1305_v15, %v1304_v14 }
 0x110   :  { %2327 = vmatpush3.bf16.msra.mxu1 %v2326_v17  ;;  %v749_v17 = vrot.slane %v722_v7, %v2529_v53 }
 0x111   :  { %2334 = vmatprep.subr.bf16.mxu1 %v2394_v0 }
 0x1c6   :  { %v831_v26 = vpop.f32.mrb[6].mxu1 }
 0x1c7   :  { %v832_v28 = vadd.f32 %v831_v26, %v729_v23  ;;  %v2109_v29 = vpop.f32.mrb[7].mxu1  ;;  %v1307_v26 = vld [vmem:[%s2811_s5 + $0xd8] sm:$0xff] }
 0x1c8   :  { %v904_v36 = vpop.f32.mrb[8].mxu0  ;;  %v753_v29 = vrot.slane %v724_v20, %v2529_v53  ;;  %v2356_v31 = vpack.c.bf16 %v1307_v26, %v1306_v25 }
 0x1c9   :  { %v1273_v35 = vmax.f32 %v832_v28, 0.0  ;;  %v905_v39 = vadd.f32 %v904_v36, %v733_v27  ;;  %v2120_v40 = vpop.f32.mrb[9].mxu0  ;;  %v1308_v36 = vld [vmem:[%s2812_s6] sm:$0x7f] }
 0x1ca   :  { %v1317_v37 = vrot.slane %v1308_v36, %v2522_v48 }
 0x1cb   :  { %2185 = vmatmul.mubr.msk.f32.vlgmr.msra.gmra.mrb[14].mxu0 %vm761_vm2, %v1273_v35  ;;  %v1274_v45 = vmax.f32 %v905_v39, 0.0 }
 0x1cc   :  { %2330 = vmatpush3.bf16.msra.mxu0 %v2329_v32  ;;  %2206 = vmatprep.mubr.msk.f32.mxu0 %vm2395_vm0, %v2396_v1  ;;  %v1325_v38 = vcombine.high %v1317_v37, %v1317_v37 }
 0x1cd   :  { %2331 = vmatprep.subr.bf16.mxu0 %v2394_v0  ;;  %2196 = vmatmul.mubr.msk.f32.vlgmr.msra.gmra.mrb[14].mxu1 %vm761_vm2, %v1274_v45  ;;  %v1310_v45 = vcombine.high %v1308_v36, %v1308_v36 }
 0x1ce   :  { %v977_v52 = vpop.f32.mrb[8].mxu1  ;;  %2336 = vmatpush3.bf16.msra.mxu1 %v2335_v43  ;;  %2217 = vmatprep.mubr.msk.f32.mxu1 %vm2395_vm0, %v2396_v1 }
 0x1cf   :  { %v978_v56 = vadd.f32 %v977_v52, %v737_v42  ;;  %v2131_v57 = vpop.f32.mrb[9].mxu1  ;;  %2337 = vmatprep.subr.bf16.mxu1 %v2394_v0  ;;  %v1324_v52 = vrot.slane %v1310_v45, %v2522_v48 }
 0x1d0   :  { %2333 = vmatpush3.bf16.msra.mxu0 %v2332_v46  ;;  %v1050_v2 = vpop.f32.mrb[10].mxu0 }
 0x1d1   :  { %v1275_v63 = vmax.f32 %v978_v56, 0.0  ;;  %2340 = vmatprep.subr.bf16.mxu0 %v2394_v0  ;;  %v1051_v5 = vadd.f32 %v1050_v2, %v741_v54  ;;  %v2142_v6 = vpop.f32.mrb[11].mxu0  ;;  %v1326_v56 = vcombine.high %v1324_v52, %v1324_v52 }
 0x1d2   :  { %2339 = vmatpush3.bf16.msra.mxu1 %v2338_v59  ;;  %v1340_v59 = vrot.slane %v1324_v52, %v2522_v48 }
 0x1d3   :  { %2207 = vmatmul.mubr.msk.f32.vlgmr.msra.gmra.mrb[16].mxu0 %vm761_vm2, %v1275_v63  ;;  %v1276_v10 = vmax.f32 %v1051_v5, 0.0  ;;  %2346 = vmatprep.subr.bf16.mxu1 %v2394_v0  ;;  %v1354_v63 = vrot.slane %v1326_v56, %v2522_v48 }
 0x1d4   :  { %2342 = vmatpush3.bf16.msra.mxu0 %v2341_v60  ;;  %2228 = vmatprep.mubr.msk.f32.mxu0 %vm2395_vm0, %v2396_v1  ;;  %v1377_v2 = vrot.slane %v1340_v59, %v2529_v53  ;;  %v1356_v7 = vcombine.high %v1340_v59, %v1340_v59 }
 0x1d5   :  { %2343 = vmatprep.subr.bf16.mxu0 %v2394_v0  ;;  %2218 = vmatmul.mubr.msk.f32.vlgmr.msra.gmra.mrb[16].mxu1 %vm761_vm2, %v1276_v10  ;;  %v1381_v4 = vrot.slane %v1354_v63, %v2529_v53 }
 0x1d6   :  { %v1123_v16 = vpop.f32.mrb[10].mxu1  ;;  %2348 = vmatpush3.bf16.msra.mxu1 %v2347_v9  ;;  %2239 = vmatprep.mubr.msk.f32.mxu1 %vm2395_vm0, %v2396_v1  ;;  %v1385_v10 = vrot.slane %v1356_v7, %v2529_v53 }
 0x1d7   :  { %v1124_v18 = vadd.f32 %v1123_v16, %v745_v8  ;;  %v2153_v19 = vpop.f32.mrb[11].mxu1  ;;  %2349 = vmatprep.subr.bf16.mxu1 %v2394_v0 }
 0x1d8   :  { %2345 = vmatpush3.bf16.msra.mxu0 %v2344_v11  ;;  %v1196_v24 = vpop.f32.mrb[12].mxu0 }
 0x1d9   :  { %v1277_v23 = vmax.f32 %v1124_v18, 0.0  ;;  %2352 = vmatprep.subr.bf16.mxu0 %v2394_v0  ;;  %v1197_v27 = vadd.f32 %v1196_v24, %v749_v17  ;;  %v2164_v28 = vpop.f32.mrb[13].mxu0 }
 0x1da   :  { %2351 = vmatpush3.bf16.msra.mxu1 %v2350_v21 }
 0x1db   :  { %2229 = vmatmul.mubr.msk.f32.vlgmr.msra.gmra.mrb[18].mxu0 %vm761_vm2, %v1277_v23  ;;  %v1278_v30 = vmax.f32 %v1197_v27, 0.0 }
 0x1dc   :  { %2354 = vmatpush3.bf16.msra.mxu0 %v2353_v22  ;;  %2250 = vmatprep.mubr.msk.f32.mxu0 %vm2395_vm0, %v2396_v1  ;;  %v1333_v1 = vrot.slane %v1317_v37, %v2522_v48 }
 0x1dd   :  { %2355 = vmatprep.subr.bf16.mxu0 %v2394_v0  ;;  %2240 = vmatmul.mubr.msk.f32.vlgmr.msra.gmra.mrb[18].mxu1 %vm761_vm2, %v1278_v30  ;;  %v1347_v0 = vrot.slane %v1325_v38, %v2522_v48 }
 0x1de   :  { %v1269_v32 = vpop.f32.mrb[12].mxu1  ;;  %v1361_v39 = vrot.slane %v1333_v1, %v2529_v53  ;;  %v1355_v44 = vcombine.high %v1333_v1, %v1333_v1 }
 0x1df   :  { %v1270_v33 = vadd.f32 %v1269_v32, %v753_v29  ;;  %v2175_v34 = vpop.f32.mrb[13].mxu1  ;;  %v1365_v41 = vrot.slane %v1347_v0, %v2529_v53  ;;  %v1357_v50 = vcombine.high %v1347_v0, %v1347_v0 }
 0x1e0   :  { %2357 = vmatpush3.bf16.msra.mxu0 %v2356_v31  ;;  %v1369_v51 = vrot.slane %v1355_v44, %v2529_v53 }
 0x1e1   :  { %v1279_v35 = vmax.f32 %v1270_v33, 0.0  ;;  %v1373_v55 = vrot.slane %v1357_v50, %v2529_v53 }
 0x1e3   :  { %2251 = vmatmul.mubr.msk.f32.vlgmr.msra.gmra.mrb[20].mxu0 %vm761_vm2, %v1279_v35 }
 0x29e   :  { %v1462_v40 = vpop.f32.mrb[14].mxu0 }
 0x29f   :  { %v1463_v42 = vadd.f32 %v1462_v40, %v1361_v39  ;;  %v2186_v43 = vpop.f32.mrb[15].mxu0 }
 0x2a0   :  { %v1535_v46 = vpop.f32.mrb[14].mxu1 }
 0x2a1   :  { %1905 = vst.msk [vmem:[%s2813_s7] sm:$0xff] %vm1904_vm3, %v1463_v42  ;;  %v1536_v47 = vadd.f32 %v1535_v46, %v1365_v41  ;;  %v2197_v49 = vpop.f32.mrb[15].mxu1 }
 0x2a3   :  { %1906 = vst.msk [vmem:[%s2813_s7 + $0x8] sm:$0xff] %vm1904_vm3, %v1536_v47 }
 0x2a6   :  { %v1608_v54 = vpop.f32.mrb[16].mxu0 }
 0x2a7   :  { %v1609_v57 = vadd.f32 %v1608_v54, %v1369_v51  ;;  %v2208_v58 = vpop.f32.mrb[17].mxu0 }
 0x2a8   :  { %v1681_v60 = vpop.f32.mrb[16].mxu1 }
 0x2a9   :  { %1907 = vst.msk [vmem:[%s2813_s7 + $0x10] sm:$0xff] %vm1904_vm3, %v1609_v57  ;;  %v1682_v61 = vadd.f32 %v1681_v60, %v1373_v55  ;;  %v2219_v62 = vpop.f32.mrb[17].mxu1 }
 0x2ab   :  { %1908 = vst.msk [vmem:[%s2813_s7 + $0x18] sm:$0xff] %vm1904_vm3, %v1682_v61 }
 0x2ae   :  { %v1754_v3 = vpop.f32.mrb[18].mxu0 }
 0x2af   :  { %v1755_v5 = vadd.f32 %v1754_v3, %v1377_v2  ;;  %v2230_v6 = vpop.f32.mrb[19].mxu0 }
 0x2b0   :  { %v1827_v8 = vpop.f32.mrb[18].mxu1 }
 0x2b1   :  { %1909 = vst.msk [vmem:[%s2813_s7 + $0x20] sm:$0xff] %vm1904_vm3, %v1755_v5  ;;  %v1828_v48 = vadd.f32 %v1827_v8, %v1381_v4  ;;  %v2241_v9 = vpop.f32.mrb[19].mxu1 }
 0x2b3   :  { %1910 = vst.msk [vmem:[%s2813_s7 + $0x28] sm:$0xff] %vm1904_vm3, %v1828_v48 }
 0x2b6   :  { %v1900_v11 = vpop.f32.mrb[20].mxu0 }
 0x2b7   :  { %v1901_v12 = vadd.f32 %v1900_v11, %v1385_v10  ;;  %v2252_v13 = vpop.f32.mrb[21].mxu0 }
 0x2b9   :  { %1911 = vst.msk [vmem:[%s2813_s7 + $0x30] sm:$0xff] %vm1904_vm3, %v1901_v12 }
 0x2ba   :  { %1916 = vsyncpa [#allocation3], 1 }

</bundles_post_ra>
